<compile_context>
chip_gen: v7x
topology: tpu7x:2x2x1
jax: 0.10.0
libtpu: 0.0.40
codegen_flags: <defaults>
</compile_context>

<pallas_src>
import math

import jax
import jax.numpy as jnp
from jax.experimental import pallas as pl
from jax.experimental.pallas import tpu as pltpu

# Logical (PyTorch) sizes and lane-padded sizes used inside the kernel.
H1, H2, OUT = 150, 70, 17
H1P, H2P, OUTP = 256, 128, 128


def actor_kernel(x_ref, w1_ref, b1_ref, w2_ref, b2_ref, w3_ref, b3_ref, o_ref):
    # One batch tile per grid step. Weights/biases are VMEM-resident across
    # steps (constant index_map). Three MXU matmuls fused with their VPU
    # ReLUs and the EUP tanh; accumulation is always f32.
    x = x_ref[...].astype(jnp.float32)          # matches input.to(torch.float32)
    cdt = w1_ref.dtype                          # matmul-input dtype (f32 or bf16)

    h1 = jnp.dot(x.astype(cdt), w1_ref[...],
                 preferred_element_type=jnp.float32) + b1_ref[...]
    h1 = jnp.maximum(h1, 0.0)                   # ReLU (f32 on VPU)

    h2 = jnp.dot(h1.astype(cdt), w2_ref[...],
                 preferred_element_type=jnp.float32) + b2_ref[...]
    h2 = jnp.maximum(h2, 0.0)                   # ReLU

    q = jnp.dot(h2.astype(cdt), w3_ref[...],
                preferred_element_type=jnp.float32) + b3_ref[...]
    o_ref[...] = 0.4 * jnp.tanh(q)              # tanh -> EUP, scale -> VPU


def actor_forward(x, padded_params, *, tb_max=512):
    """x: [B, nstate] (any float dtype). padded_params: from pad_params()."""
    w1, b1, w2, b2, w3, b3 = padded_params
    B, nstate = x.shape
    x = x.astype(jnp.float32)

    # Pad batch to a sublane multiple and to a multiple of the tile size so
    # every grid step sees a full (TB, nstate) / (TB, OUTP) block.
    bp = max(8, -(-B // 8) * 8)
    tb = min(tb_max, bp)
    bp = -(-bp // tb) * tb
    if bp != B:
        x = jnp.pad(x, ((0, bp - B), (0, 0)))

    resident = lambda shape: pl.BlockSpec(shape, lambda i: (0, 0))  # noqa: E731

    out = pl.pallas_call(
        actor_kernel,
        out_shape=jax.ShapeDtypeStruct((bp, OUTP), jnp.float32),
        grid=(bp // tb,),
        in_specs=[
            pl.BlockSpec((tb, nstate), lambda i: (i, 0)),   # x: streamed per tile
            resident(w1.shape), resident(b1.shape),          # weights/biases: stay in VMEM
            resident(w2.shape), resident(b2.shape),
            resident(w3.shape), resident(b3.shape),
        ],
        out_specs=pl.BlockSpec((tb, OUTP), lambda i: (i, 0)),
        compiler_params=pltpu.CompilerParams(
            dimension_semantics=("parallel",)),              # 2 TCs on v7x
    )(x, w1, b1, w2, b2, w3, b3)

    return out[:B, :OUT]


def init_params(key, nstate):
    # Deterministic init mimicking torch.nn.Linear default:
    # U(-1/sqrt(fan_in), 1/sqrt(fan_in)).  Unpadded, f32.
    def linear(key, fan_in, fan_out):
        kw, kb = jax.random.split(key)
        bound = 1.0 / math.sqrt(fan_in)
        w = jax.random.uniform(kw, (fan_in, fan_out), jnp.float32, -bound, bound)
        b = jax.random.uniform(kb, (1, fan_out), jnp.float32, -bound, bound)
        return w, b

    k1, k2, k3 = jax.random.split(key, 3)
    w1, b1 = linear(k1, nstate, H1)
    w2, b2 = linear(k2, H1, H2)
    w3, b3 = linear(k3, H2, OUT)
    return (w1, b1, w2, b2, w3, b3)


def pad_params(params, weights_dtype=jnp.float32):
    # Zero-pad feature dims to lane multiples. Zeros propagate harmlessly:
    # ReLU(0)=0 and the padded input rows of the next layer's weight are 0,
    # so the padded output lanes are exactly 0.4*tanh(0)=0 and get sliced off.
    w1, b1, w2, b2, w3, b3 = params
    nstate = w1.shape[0]

    def padw(w, rows, cols):
        out = jnp.zeros((rows, cols), jnp.float32)
        out = out.at[: w.shape[0], : w.shape[1]].set(w)
        return out.astype(weights_dtype)

    def padb(b, cols):  # biases stay f32 (added to the f32 accumulator)
        return jnp.zeros((1, cols), jnp.float32).at[:, : b.shape[1]].set(b)

    return (padw(w1, nstate, H1P), padb(b1, H1P),
            padw(w2, H1P, H2P), padb(b2, H2P),
            padw(w3, H2P, OUTP), padb(b3, OUTP))


def actor_reference(x, params):
    w1, b1, w2, b2, w3, b3 = params
    h1 = jnp.maximum(x.astype(jnp.float32) @ w1 + b1, 0.0)
    h2 = jnp.maximum(h1 @ w2 + b2, 0.0)
    return 0.4 * jnp.tanh(h2 @ w3 + b3)


if __name__ == "__main__":
    key = jax.random.PRNGKey(0)
    k_x, k_x2, k_p = jax.random.split(key, 3)

    nstate = 32
    params = init_params(k_p, nstate)
    padded_f32 = pad_params(params, jnp.float32)
    padded_bf16 = pad_params(params, jnp.bfloat16)

    # --- small batch (B=2), single grid step, f32 weights: exact path ------
    x_small = jax.random.normal(k_x, (2, nstate), jnp.float32)
    out_small = jax.block_until_ready(actor_forward(x_small, padded_f32))
    ref_small = actor_reference(x_small, params)
    assert out_small.shape == (2, OUT)
    assert jnp.allclose(out_small, ref_small, atol=1e-5, rtol=1e-5)

    # --- larger, non-multiple batch: exercises batch tiling + pad/slice ----
    x_big = jax.random.normal(k_x2, (600, nstate), jnp.float32)
    out_big = jax.block_until_ready(actor_forward(x_big, padded_f32, tb_max=256))
    ref_big = actor_reference(x_big, params)
    assert out_big.shape == (600, OUT)
    assert jnp.allclose(out_big, ref_big, atol=1e-4, rtol=1e-4)

    # --- bf16-weight fast path (v6e/v7x MXU), f32 accumulation -------------
    out_bf16 = jax.block_until_ready(actor_forward(x_big, padded_bf16, tb_max=256))
    assert out_bf16.shape == (600, OUT)
    assert jnp.allclose(out_bf16, ref_big, atol=5e-2, rtol=0)

    print("KERNEL_OK")
</pallas_src>

<mosaic_0001>
module attributes {stable_mosaic.version = 11 : i64} {
  func.func @actor_kernel(%arg0: i32, %arg1: memref<8x32xf32, #tpu.memory_space<vmem>>, %arg2: memref<32x256xf32, #tpu.memory_space<vmem>>, %arg3: memref<1x256xf32, #tpu.memory_space<vmem>>, %arg4: memref<256x128xf32, #tpu.memory_space<vmem>>, %arg5: memref<1x128xf32, #tpu.memory_space<vmem>>, %arg6: memref<128x128xf32, #tpu.memory_space<vmem>>, %arg7: memref<1x128xf32, #tpu.memory_space<vmem>>, %arg8: memref<8x128xf32, #tpu.memory_space<vmem>>) attributes {dimension_semantics = [#tpu.dimension_semantics<parallel>], iteration_bounds = array<i64: 1>, scalar_prefetch = 0 : i64, scratch_operands = 0 : i64, tpu.core_type = #tpu.core_type<tc>, window_params = [{transform_indices = @transform_0, window_bounds = array<i64: 8, 32>}, {pipeline_mode = #tpu.pipeline_mode<synchronous>, transform_indices = @transform_1, window_bounds = array<i64: 32, 256>}, {pipeline_mode = #tpu.pipeline_mode<synchronous>, transform_indices = @transform_2, window_bounds = array<i64: 1, 256>}, {pipeline_mode = #tpu.pipeline_mode<synchronous>, transform_indices = @transform_3, window_bounds = array<i64: 256, 128>}, {pipeline_mode = #tpu.pipeline_mode<synchronous>, transform_indices = @transform_4, window_bounds = array<i64: 1, 128>}, {pipeline_mode = #tpu.pipeline_mode<synchronous>, transform_indices = @transform_5, window_bounds = array<i64: 128, 128>}, {pipeline_mode = #tpu.pipeline_mode<synchronous>, transform_indices = @transform_6, window_bounds = array<i64: 1, 128>}, {transform_indices = @transform_7, window_bounds = array<i64: 8, 128>}]} {
    %c0 = arith.constant 0 : index
    %c0_0 = arith.constant 0 : index
    %0 = vector.load %arg1[%c0, %c0_0] : memref<8x32xf32, #tpu.memory_space<vmem>>, vector<8x32xf32>
    %c0_1 = arith.constant 0 : index
    %c0_2 = arith.constant 0 : index
    %1 = vector.load %arg2[%c0_1, %c0_2] : memref<32x256xf32, #tpu.memory_space<vmem>>, vector<32x256xf32>
    %cst = arith.constant dense<0.000000e+00> : vector<8x256xf32>
    %2 = tpu.matmul %0, %1, %cst {dimension_numbers = #tpu.dot_dimension_numbers<[1], [0], [0], [1], [0, 0, 1, 1], [], []>} : vector<8x32xf32>, vector<32x256xf32>, vector<8x256xf32> -> vector<8x256xf32>
    %c0_3 = arith.constant 0 : index
    %c0_4 = arith.constant 0 : index
    %3 = vector.load %arg3[%c0_3, %c0_4] : memref<1x256xf32, #tpu.memory_space<vmem>>, vector<1x256xf32>
    %4 = vector.broadcast %3 : vector<1x256xf32> to vector<8x256xf32>
    %5 = arith.addf %2, %4 : vector<8x256xf32>
    %cst_5 = arith.constant 0.000000e+00 : f32
    %6 = vector.broadcast %cst_5 : f32 to vector<8x256xf32>
    %7 = arith.maximumf %5, %6 : vector<8x256xf32>
    %c0_6 = arith.constant 0 : index
    %c0_7 = arith.constant 0 : index
    %8 = vector.load %arg4[%c0_6, %c0_7] : memref<256x128xf32, #tpu.memory_space<vmem>>, vector<256x128xf32>
    %cst_8 = arith.constant dense<0.000000e+00> : vector<8x128xf32>
    %9 = tpu.matmul %7, %8, %cst_8 {dimension_numbers = #tpu.dot_dimension_numbers<[1], [0], [0], [1], [0, 0, 1, 1], [], []>} : vector<8x256xf32>, vector<256x128xf32>, vector<8x128xf32> -> vector<8x128xf32>
    %c0_9 = arith.constant 0 : index
    %c0_10 = arith.constant 0 : index
    %10 = vector.load %arg5[%c0_9, %c0_10] : memref<1x128xf32, #tpu.memory_space<vmem>>, vector<1x128xf32>
    %11 = vector.broadcast %10 : vector<1x128xf32> to vector<8x128xf32>
    %12 = arith.addf %9, %11 : vector<8x128xf32>
    %cst_11 = arith.constant 0.000000e+00 : f32
    %13 = vector.broadcast %cst_11 : f32 to vector<8x128xf32>
    %14 = arith.maximumf %12, %13 : vector<8x128xf32>
    %c0_12 = arith.constant 0 : index
    %c0_13 = arith.constant 0 : index
    %15 = vector.load %arg6[%c0_12, %c0_13] : memref<128x128xf32, #tpu.memory_space<vmem>>, vector<128x128xf32>
    %cst_14 = arith.constant dense<0.000000e+00> : vector<8x128xf32>
    %16 = tpu.matmul %14, %15, %cst_14 {dimension_numbers = #tpu.dot_dimension_numbers<[1], [0], [0], [1], [0, 0, 1, 1], [], []>} : vector<8x128xf32>, vector<128x128xf32>, vector<8x128xf32> -> vector<8x128xf32>
    %c0_15 = arith.constant 0 : index
    %c0_16 = arith.constant 0 : index
    %17 = vector.load %arg7[%c0_15, %c0_16] : memref<1x128xf32, #tpu.memory_space<vmem>>, vector<1x128xf32>
    %18 = vector.broadcast %17 : vector<1x128xf32> to vector<8x128xf32>
    %19 = arith.addf %16, %18 : vector<8x128xf32>
    %20 = math.tanh %19 : vector<8x128xf32>
    %cst_17 = arith.constant 4.000000e-01 : f32
    %21 = vector.broadcast %cst_17 : f32 to vector<8x128xf32>
    %22 = arith.mulf %21, %20 : vector<8x128xf32>
    %c0_18 = arith.constant 0 : index
    %c0_19 = arith.constant 0 : index
    %23 = vector.load %arg8[%c0_18, %c0_19] : memref<8x128xf32, #tpu.memory_space<vmem>>, vector<8x128xf32>
    tpu.vector_store %arg8[%c0_18, %c0_19], %22 {strides = array<i32>} : memref<8x128xf32, #tpu.memory_space<vmem>>, vector<8x128xf32>,
    return
  }
  func.func @transform_0(%arg0: i32) -> (i32, i32) {
    %c0_i32 = arith.constant 0 : i32
    %c0_i32_0 = arith.constant 0 : i32
    return %arg0, %c0_i32 : i32, i32
  }
  func.func @transform_1(%arg0: i32) -> (i32, i32) {
    %c0_i32 = arith.constant 0 : i32
    %c0_i32_0 = arith.constant 0 : i32
    %c0_i32_1 = arith.constant 0 : i32
    return %c0_i32, %c0_i32_0 : i32, i32
  }
  func.func @transform_2(%arg0: i32) -> (i32, i32) {
    %c0_i32 = arith.constant 0 : i32
    %c0_i32_0 = arith.constant 0 : i32
    %c0_i32_1 = arith.constant 0 : i32
    return %c0_i32, %c0_i32_0 : i32, i32
  }
  func.func @transform_3(%arg0: i32) -> (i32, i32) {
    %c0_i32 = arith.constant 0 : i32
    %c0_i32_0 = arith.constant 0 : i32
    %c0_i32_1 = arith.constant 0 : i32
    return %c0_i32, %c0_i32_0 : i32, i32
  }
  func.func @transform_4(%arg0: i32) -> (i32, i32) {
    %c0_i32 = arith.constant 0 : i32
    %c0_i32_0 = arith.constant 0 : i32
    %c0_i32_1 = arith.constant 0 : i32
    return %c0_i32, %c0_i32_0 : i32, i32
  }
  func.func @transform_5(%arg0: i32) -> (i32, i32) {
    %c0_i32 = arith.constant 0 : i32
    %c0_i32_0 = arith.constant 0 : i32
    %c0_i32_1 = arith.constant 0 : i32
    return %c0_i32, %c0_i32_0 : i32, i32
  }
  func.func @transform_6(%arg0: i32) -> (i32, i32) {
    %c0_i32 = arith.constant 0 : i32
    %c0_i32_0 = arith.constant 0 : i32
    %c0_i32_1 = arith.constant 0 : i32
    return %c0_i32, %c0_i32_0 : i32, i32
  }
  func.func @transform_7(%arg0: i32) -> (i32, i32) {
    %c0_i32 = arith.constant 0 : i32
    %c0_i32_0 = arith.constant 0 : i32
    return %arg0, %c0_i32 : i32, i32
  }
}

</mosaic_0001>

<bundles_post_ra>
// kernel: tpu_custom_call.1
= control target key start
LH: loop header
LB: loop body
LE: loop exit
PB: predicated region body
PF: predicated region fallthrough
CT: control target
= control target key end

     0   :  { %12 = vsyncpa [#allocation3], 0  ;;  %s810_s0 = inlined_call_operand.hbm [shape: f32[8,32], index: 0, kind: input, shape index: {}]   ;;  %s811_s1 = inlined_call_operand.hbm [shape: f32[32,256], index: 1, kind: input, shape index: {}]   ;;  %s812_s2 = inlined_call_operand.vmem [shape: f32[1,256], index: 2, kind: input, shape index: {}]   ;;  %s813_s3 = inlined_call_operand.hbm [shape: f32[256,128], index: 3, kind: input, shape index: {}]   ;;  %s814_s4 = inlined_call_operand.vmem [shape: f32[1,128], index: 4, kind: input, shape index: {}]   ;;  %s815_s5 = inlined_call_operand.hbm [shape: f32[128,128], index: 5, kind: input, shape index: {}]   ;;  %s816_s6 = inlined_call_operand.vmem [shape: f32[1,128], index: 6, kind: input, shape index: {}]   ;;  %s817_s7 = inlined_call_operand.hbm [shape: f32[8,128], index: 7, kind: output, shape index: {}]  }
   0x1   :  { %13 = vsyncpa [#allocation6], 0 }
   0x2   :  { %14 = vsyncpa [#allocation9], 0 }
   0x3   :  { %15 = vsyncpa [#allocation4], 0  ;;  %s687_s24 = smov [#allocation5]   ;;  %s569_s28 = scalar_lea.hbm %s811_s1, 1024 }
   0x4   :  { %s31_s25 = sshll.u32 %s687_s24, 4  ;;  %p570_p0 = scmp.ne.s32.totalorder %s811_s1, %s569_s28  ;;  %s32_s25 = int_to_ptr.vmem [resolvable:$true] %s31_s25 }
   0x5   :  { %p573_p1 = scmp.lt.u32.totalorder %s569_s28, %s811_s1 }
   0x7   :  { %p575_p2 = pnand %p573_p1, %p570_p0 }
   0x9   :  { %578 = shalt.err (!%p575_p2)
}
   0xa   :  { %s579_s10 = scalar_lea.vmem %s32_s25, 1024  ;;  %p584_p4 = scmp.lt.s32.totalorder %s32_s25, %s32_s25 }
   0xb   :  { %p580_p3 = scmp.ne.s32.totalorder %s32_s25, %s579_s10  ;;  %p585_p5 = scmp.lt.s32.totalorder %s579_s10, %s579_s10 }
   0xd   :  { %p586_p6 = por %p585_p5, %p584_p4 }
   0xf   :  { %p587_p7 = pnand %p586_p6, %p580_p3 }
  0x11   :  { %590 = shalt.err (!%p587_p7)
}
  0x12   :  { %s688_s11 = smov 256   ;;  %s689_s12 = smov 16  }
  0x13   :  { %37 = dma.hbm_to_vmem [thread:$0]  %s811_s1, 1024, %s32_s25, [#allocation6], %s688_s11, %s688_s11, %s689_s12  }
  0x14   :  { %s690_s15 = smov [#allocation2]   ;;  %s691_s17 = smov [#allocation7]  }
  0x15   :  { %s22_s16 = sshll.u32 %s690_s15, 4  ;;  %s45_s18 = sshll.u32 %s691_s17, 4  ;;  %s23_s16 = int_to_ptr.vmem [resolvable:$true] %s22_s16  ;;  %s46_s18 = int_to_ptr.vmem [resolvable:$true] %s45_s18 }
  0x16   :  { %s591_s21 = scalar_lea.hbm %s810_s0, 128 }
  0x17   :  { %p592_p8 = scmp.ne.s32.totalorder %s810_s0, %s591_s21  ;;  %p595_p9 = scmp.lt.u32.totalorder %s591_s21, %s810_s0 }
  0x19   :  { %p597_p10 = pnand %p595_p9, %p592_p8 }
  0x1b   :  { %600 = shalt.err (!%p597_p10)
}
  0x1c   :  { %s601_s1 = scalar_lea.vmem %s23_s16, 128  ;;  %p606_p12 = scmp.lt.s32.totalorder %s23_s16, %s23_s16 }
  0x1d   :  { %p602_p11 = scmp.ne.s32.totalorder %s23_s16, %s601_s1  ;;  %p607_p13 = scmp.lt.s32.totalorder %s601_s1, %s601_s1 }
  0x1f   :  { %p608_p0 = por %p607_p13, %p606_p12 }
  0x21   :  { %p609_p1 = pnand %p608_p0, %p602_p11 }
  0x23   :  { %612 = shalt.err (!%p609_p1)
}
  0x24   :  { %25 = dma.hbm_to_vmem [thread:$0]  %s810_s0, 128, %s23_s16, [#allocation3]  }
  0x25   :  { %s613_s30 = scalar_lea.hbm %s813_s3, 4096 }
  0x26   :  { %p614_p2 = scmp.ne.s32.totalorder %s813_s3, %s613_s30  ;;  %p617_p3 = scmp.lt.u32.totalorder %s613_s30, %s813_s3 }
  0x28   :  { %p619_p4 = pnand %p617_p3, %p614_p2 }
  0x2a   :  { %622 = shalt.err (!%p619_p4)
}
  0x2b   :  { %s623_s12 = scalar_lea.vmem %s46_s18, 4096  ;;  %p628_p6 = scmp.lt.s32.totalorder %s46_s18, %s46_s18 }
  0x2c   :  { %p624_p5 = scmp.ne.s32.totalorder %s46_s18, %s623_s12  ;;  %p629_p7 = scmp.lt.s32.totalorder %s623_s12, %s623_s12 }
  0x2e   :  { %p630_p8 = por %p629_p7, %p628_p6 }
  0x30   :  { %p631_p9 = pnand %p630_p8, %p624_p5 }
  0x32   :  { %634 = shalt.err (!%p631_p9)
}
  0x33   :  { %s692_s0 = smov 128   ;;  %s693_s13 = smov 8  }
  0x34   :  { %51 = dma.hbm_to_vmem [thread:$0]  %s813_s3, 4096, %s46_s18, [#allocation6], %s692_s0, %s692_s0, %s693_s13  }
  0x35   :  { %s694_s16 = smov [#allocation8]   ;;  %s635_s21 = scalar_lea.hbm %s815_s5, 2048 }
  0x36   :  { %s59_s17 = sshll.u32 %s694_s16, 4  ;;  %p636_p10 = scmp.ne.s32.totalorder %s815_s5, %s635_s21  ;;  %s60_s17 = int_to_ptr.vmem [resolvable:$true] %s59_s17 }
  0x37   :  { %p639_p11 = scmp.lt.u32.totalorder %s635_s21, %s815_s5 }
  0x39   :  { %p641_p12 = pnand %p639_p11, %p636_p10 }
  0x3b   :  { %644 = shalt.err (!%p641_p12)
}
  0x3c   :  { %s645_s1 = scalar_lea.vmem %s60_s17, 2048  ;;  %p650_p0 = scmp.lt.s32.totalorder %s60_s17, %s60_s17 }
  0x3d   :  { %p646_p13 = scmp.ne.s32.totalorder %s60_s17, %s645_s1  ;;  %p651_p1 = scmp.lt.s32.totalorder %s645_s1, %s645_s1 }
  0x3f   :  { %p652_p2 = por %p651_p1, %p650_p0 }
  0x41   :  { %p653_p3 = pnand %p652_p2, %p646_p13 }
  0x43   :  { %656 = shalt.err (!%p653_p3)
}
  0x44   :  { %65 = dma.hbm_to_vmem [thread:$0]  %s815_s5, 2048, %s60_s17, [#allocation9], %s692_s0, %s692_s0, %s693_s13  }
  0x45   :  { %679 = dma.done.wait [#allocation3], 128  }
  0x46   :  { %680 = vsyncadd [#allocation3], 4294967168 }
  0x47   :  { %681 = dma.done.wait [#allocation6], 5120  }
  0x48   :  { %682 = vsyncadd [#allocation6], 4294962176 }
  0x49   :  { %683 = dma.done.wait [#allocation9], 2048  }
  0x4a   :  { %684 = vsyncadd [#allocation9], 4294965248  ;;  %v695_v0 = vmov 0.0   ;;  %v82_v1 = vld [vmem:[#allocation5 + $0x8] sm:$0xff]  ;;  %v84_v2 = vld [vmem:[#allocation5 + $0x18] sm:$0xff]  ;;  %vm101_vm0 = vcmask 261120  }
  0x4b   :  { %169 = vmatprep.mubr.f32.mxu0 %v695_v0  ;;  %v81_v3 = vld [vmem:[#allocation5] sm:$0xff]  ;;  %v491_v4 = vpack.c.bf16 %v84_v2, %v82_v1  ;;  %v83_v5 = vld [vmem:[#allocation5 + $0x10] sm:$0xff]  ;;  %v86_v6 = vld [vmem:[#allocation5 + $0x28] sm:$0xff]  ;;  %v696_v2 = vmov 0.0|0.0   ;;  %vm697_vm1 = vmmov 0   ;;  %s698_s30 = smov [#allocation10]  }
  0x4c   :  { %v88_v7 = vld [vmem:[#allocation5 + $0x38] sm:$0xff]  ;;  %v493_v8 = vpack.c.bf16 %v83_v5, %v81_v3  ;;  %v85_v10 = vld [vmem:[#allocation5 + $0x20] sm:$0xff]  ;;  %v87_v11 = vld [vmem:[#allocation5 + $0x30] sm:$0xff]  ;;  %s390_s8 = sshll.u32 %s698_s30, 4  ;;  %s391_s8 = int_to_ptr.vmem [resolvable:$true] %s390_s8 }
  0x4d   :  { %v495_v9 = vpack.c.bf16 %v88_v7, %v86_v6  ;;  %492 = vmatprep.subr.bf16.mxu0 %v491_v4  ;;  %v194_v12 = vld [vmem:[#allocation7 + $0x80] sm:$0xff]  ;;  %v195_v13 = vld [vmem:[#allocation7 + $0x88] sm:$0xff]  ;;  %v497_v15 = vpack.c.bf16 %v87_v11, %v85_v10  ;;  %v196_v18 = vld [vmem:[#allocation7 + $0x90] sm:$0xff]  ;;  %p662_p5 = scmp.lt.s32.totalorder %s391_s8, %s391_s8 }
  0x4e   :  { %v178_v14 = vld [vmem:[#allocation7] sm:$0xff]  ;;  %494 = vmatpush1.bf16.msra.mxu0 %v493_v8  ;;  %v499_v16 = vpack.c.bf16 %v195_v13, %v194_v12  ;;  %v179_v17 = vld [vmem:[#allocation7 + $0x8] sm:$0xff]  ;;  %v197_v19 = vld [vmem:[#allocation7 + $0x98] sm:$0xff] }
  0x4f   :  { %496 = vmatprep.subr.bf16.mxu0 %v495_v9  ;;  %v501_v20 = vpack.c.bf16 %v179_v17, %v178_v14  ;;  %v503_v21 = vpack.c.bf16 %v197_v19, %v196_v18  ;;  %v180_v22 = vld [vmem:[#allocation7 + $0x10] sm:$0xff]  ;;  %v181_v23 = vld [vmem:[#allocation7 + $0x18] sm:$0xff]  ;;  %v198_v24 = vld [vmem:[#allocation7 + $0xa0] sm:$0xff]  ;;  %v91_v18 = vlaneseq }
  0x50   :  { %500 = vmatprep.subr.bf16.mxu1 %v499_v16  ;;  %v199_v25 = vld [vmem:[#allocation7 + $0xa8] sm:$0xff]  ;;  %v505_v26 = vpack.c.bf16 %v181_v23, %v180_v22  ;;  %v80_v27 = vld [vmem:[#allocation2] sm:$0xff]  ;;  %v182_v29 = vld [vmem:[#allocation7 + $0x20] sm:$0xff] }
  0x51   :  { %502 = vmatpush3.bf16.msra.mxu1 %v501_v20  ;;  %v507_v28 = vpack.c.bf16 %v199_v25, %v198_v24  ;;  %v183_v30 = vld [vmem:[#allocation7 + $0x28] sm:$0xff]  ;;  %v200_v31 = vld [vmem:[#allocation7 + $0xb0] sm:$0xff]  ;;  %v201_v32 = vld [vmem:[#allocation7 + $0xb8] sm:$0xff]  ;;  %v92_v19 = vshrl.u32 %v91_v18, 7 }
  0x52   :  { %498 = vmatpush1.bf16.msra.mxu0 %v497_v15  ;;  %504 = vmatprep.subr.bf16.mxu1 %v503_v21  ;;  %v509_v33 = vpack.c.bf16 %v183_v30, %v182_v29  ;;  %v511_v34 = vpack.c.bf16 %v201_v32, %v200_v31  ;;  %v184_v35 = vld [vmem:[#allocation7 + $0x30] sm:$0xff]  ;;  %v185_v36 = vld [vmem:[#allocation7 + $0x38] sm:$0xff]  ;;  %v202_v37 = vld [vmem:[#allocation7 + $0xc0] sm:$0xff] }
  0x53   :  { %v203_v38 = vld [vmem:[#allocation7 + $0xc8] sm:$0xff]  ;;  %v513_v39 = vpack.c.bf16 %v185_v36, %v184_v35  ;;  %v186_v41 = vld [vmem:[#allocation7 + $0x40] sm:$0xff]  ;;  %v204_v43 = vld [vmem:[#allocation7 + $0xd0] sm:$0xff]  ;;  %531 = vmatprep.subr.bf16.mxu0 %v696_v2  ;;  %v93_v20 = vsub.s32 0, %v92_v19  ;;  %v97_v22 = vsub.s32 1, %v92_v19 }
  0x54   :  { %v515_v40 = vpack.c.bf16 %v203_v38, %v202_v37  ;;  %v187_v42 = vld [vmem:[#allocation7 + $0x48] sm:$0xff]  ;;  %v205_v44 = vld [vmem:[#allocation7 + $0xd8] sm:$0xff]  ;;  %v188_v47 = vld [vmem:[#allocation7 + $0x50] sm:$0xff] }
  0x55   :  { %401 = vmatmul.mubr.msk.f32.vlgmr.msra.gmra.mrb[0].mxu0 %vm101_vm0, %v80_v27  ;;  %506 = vmatpush3.bf16.msra.mxu1 %v505_v26  ;;  %v517_v45 = vpack.c.bf16 %v187_v42, %v186_v41  ;;  %v519_v46 = vpack.c.bf16 %v205_v44, %v204_v43  ;;  %v189_v48 = vld [vmem:[#allocation7 + $0x58] sm:$0xff]  ;;  %v206_v49 = vld [vmem:[#allocation7 + $0xe0] sm:$0xff]  ;;  %v207_v50 = vld [vmem:[#allocation7 + $0xe8] sm:$0xff] }
  0x56   :  { %508 = vmatprep.subr.bf16.mxu1 %v507_v28  ;;  %v521_v51 = vpack.c.bf16 %v189_v48, %v188_v47  ;;  %v523_v52 = vpack.c.bf16 %v207_v50, %v206_v49  ;;  %v190_v53 = vld [vmem:[#allocation7 + $0x60] sm:$0xff]  ;;  %v191_v54 = vld [vmem:[#allocation7 + $0x68] sm:$0xff]  ;;  %v208_v56 = vld [vmem:[#allocation7 + $0xf0] sm:$0xff]  ;;  %488 = vmatprep.mubr.msk.f32.mxu0 %vm697_vm1, %v695_v0 }
  0x57   :  { %v525_v55 = vpack.c.bf16 %v191_v54, %v190_v53  ;;  %v209_v57 = vld [vmem:[#allocation7 + $0xf8] sm:$0xff]  ;;  %v192_v59 = vld [vmem:[#allocation7 + $0x70] sm:$0xff]  ;;  %v288_v62 = vld [vmem:[#allocation8] sm:$0xff] }
  0x58   :  { %v527_v58 = vpack.c.bf16 %v209_v57, %v208_v56  ;;  %v193_v60 = vld [vmem:[#allocation7 + $0x78] sm:$0xff]  ;;  %v289_v63 = vld [vmem:[#allocation8 + $0x8] sm:$0xff]  ;;  %v290_v1 = vld [vmem:[#allocation8 + $0x10] sm:$0xff] }
  0x59   :  { %510 = vmatpush3.bf16.msra.mxu1 %v509_v33  ;;  %v529_v61 = vpack.c.bf16 %v193_v60, %v192_v59  ;;  %v532_v3 = vpack.c.bf16 %v289_v63, %v288_v62  ;;  %v291_v4 = vld [vmem:[#allocation8 + $0x18] sm:$0xff]  ;;  %v292_v6 = vld [vmem:[#allocation8 + $0x20] sm:$0xff]  ;;  %v293_v7 = vld [vmem:[#allocation8 + $0x28] sm:$0xff] }
  0x5a   :  { %512 = vmatprep.subr.bf16.mxu1 %v511_v34  ;;  %v535_v5 = vpack.c.bf16 %v291_v4, %v290_v1  ;;  %v538_v8 = vpack.c.bf16 %v293_v7, %v292_v6  ;;  %v294_v9 = vld [vmem:[#allocation8 + $0x30] sm:$0xff]  ;;  %v295_v10 = vld [vmem:[#allocation8 + $0x38] sm:$0xff]  ;;  %v296_v12 = vld [vmem:[#allocation8 + $0x40] sm:$0xff] }
  0x5b   :  { %533 = vmatpush3.bf16.msra.mxu0 %v532_v3  ;;  %v541_v11 = vpack.c.bf16 %v295_v10, %v294_v9  ;;  %v297_v13 = vld [vmem:[#allocation8 + $0x48] sm:$0xff]  ;;  %v298_v15 = vld [vmem:[#allocation8 + $0x50] sm:$0xff]  ;;  %v299_v16 = vld [vmem:[#allocation8 + $0x58] sm:$0xff] }
  0x5c   :  { %534 = vmatprep.subr.bf16.mxu0 %v696_v2  ;;  %v544_v14 = vpack.c.bf16 %v297_v13, %v296_v12  ;;  %v547_v17 = vpack.c.bf16 %v299_v16, %v298_v15  ;;  %v89_v21 = vld [vmem:[%s812_s2] sm:$0x3]  ;;  %v300_v31 = vld [vmem:[#allocation8 + $0x60] sm:$0xff]  ;;  %v301_v32 = vld [vmem:[#allocation8 + $0x68] sm:$0xff] }
  0x5d   :  { %514 = vmatpush3.bf16.msra.mxu1 %v513_v39  ;;  %v94_v23 = vrot.slane %v89_v21, %v93_v20  ;;  %v98_v24 = vrot.slane %v89_v21, %v97_v22  ;;  %v550_v33 = vpack.c.bf16 %v301_v32, %v300_v31  ;;  %v302_v34 = vld [vmem:[#allocation8 + $0x70] sm:$0xff]  ;;  %v303_v35 = vld [vmem:[#allocation8 + $0x78] sm:$0xff] }
  0x5e   :  { %516 = vmatprep.subr.bf16.mxu1 %v515_v40  ;;  %v553_v36 = vpack.c.bf16 %v303_v35, %v302_v34  ;;  %v402_v38 = vld [vmem:[%s814_s4] ss:$0 sm:$0xff]  ;;  %s657_s4 = scalar_lea.vmem %s391_s8, 128 }
  0x5f   :  { %536 = vmatpush3.bf16.msra.mxu0 %v535_v5  ;;  %v403_v43 = vld [vmem:[%s816_s6] ss:$0 sm:$0xff]  ;;  %p658_p4 = scmp.ne.s32.totalorder %s391_s8, %s657_s4  ;;  %p663_p6 = scmp.lt.s32.totalorder %s657_s4, %s657_s4 }
  0x60   :  { %537 = vmatprep.subr.bf16.mxu0 %v696_v2 }
  0x61   :  { %518 = vmatpush3.bf16.msra.mxu1 %v517_v45  ;;  %p664_p7 = por %p663_p6, %p662_p5 }
  0x62   :  { %520 = vmatprep.subr.bf16.mxu1 %v519_v46 }
  0x63   :  { %539 = vmatpush3.bf16.msra.mxu0 %v538_v8  ;;  %p665_p8 = pnand %p664_p7, %p658_p4 }
  0x64   :  { %540 = vmatprep.subr.bf16.mxu0 %v696_v2 }
  0x65   :  { %522 = vmatpush3.bf16.msra.mxu1 %v521_v51 }
  0x66   :  { %524 = vmatprep.subr.bf16.mxu1 %v523_v52 }
  0x67   :  { %542 = vmatpush3.bf16.msra.mxu0 %v541_v11 }
  0x68   :  { %543 = vmatprep.subr.bf16.mxu0 %v696_v2 }
  0x69   :  { %526 = vmatpush3.bf16.msra.mxu1 %v525_v55 }
  0x6a   :  { %528 = vmatprep.subr.bf16.mxu1 %v527_v58 }
  0x6b   :  { %545 = vmatpush3.bf16.msra.mxu0 %v544_v14 }
  0x6c   :  { %546 = vmatprep.subr.bf16.mxu0 %v696_v2 }
  0x6d   :  { %530 = vmatpush3.bf16.msra.mxu1 %v529_v61 }
  0x6f   :  { %548 = vmatpush3.bf16.msra.mxu0 %v547_v17 }
  0x70   :  { %549 = vmatprep.subr.bf16.mxu0 %v696_v2 }
  0x73   :  { %551 = vmatpush3.bf16.msra.mxu0 %v550_v33 }
  0x74   :  { %552 = vmatprep.subr.bf16.mxu0 %v696_v2 }
  0x77   :  { %554 = vmatpush3.bf16.msra.mxu0 %v553_v36 }
 0x128   :  { %v171_v25 = vpop.f32.mrb[0].mxu0 }
 0x129   :  { %v172_v26 = vadd.f32 %v171_v25, %v94_v23  ;;  %v173_v27 = vpop.f32.mrb[1].mxu0 }
 0x12a   :  { %v174_v28 = vadd.f32 %v173_v27, %v98_v24 }
 0x12b   :  { %v176_v30 = vmax.f32 %v172_v26, 0.0 }
 0x12c   :  { %v177_v29 = vmax.f32 %v174_v28, 0.0 }
 0x12e   :  { %281 = vmatprep.mubr.f32.mxu1 %v177_v29 }
 0x12f   :  { %282 = vmatmul.mubr.f32.vlgmr.msra.gmra.mrb[0].mxu1 %v176_v30 }
 0x202   :  { %v436_v37 = vpop.f32.mrb[0].mxu1 }
 0x203   :  { %v437_v39 = vpop.f32.mrb[1].mxu1 }
 0x204   :  { %v438_v40 = vadd.f32 %v437_v39, %v436_v37 }
 0x206   :  { %v284_v41 = vadd.f32 %v438_v40, %v402_v38 }
 0x208   :  { %v287_v42 = vmax.f32 %v284_v41, 0.0 }
 0x20a   :  { %489 = vmatmul.mubr.f32.vlgmr.msra.gmra.mrb[2].mxu0 %v287_v42 }
 0x2dd   :  { %v377_v44 = vpop.f32.mrb[2].mxu0 }
 0x2de   :  { %v378_v45 = vadd.f32 %v403_v43, %v377_v44  ;;  %v490_v46 = vpop.f32.mrb[3].mxu0 }
 0x2e0   :  { %567 = vtanh.f32 %v378_v45 }
 0x2ea   :  { %v568_v0 = vpop.eup %567 }
 0x2eb   :  { %v382_v47 = vmul.f32 0.4, %v568_v0 }
 0x2ed   :  { %383 = vst [vmem:[#allocation10] sm:$0xff] %v382_v47 }
 0x2ee   :  { %668 = shalt.err (!%p665_p8)
}
 0x2ef   :  { %s669_s6 = scalar_lea.hbm %s817_s7, 128 }
 0x2f0   :  { %p670_p9 = scmp.ne.s32.totalorder %s817_s7, %s669_s6  ;;  %p673_p10 = scmp.lt.u32.totalorder %s669_s6, %s817_s7 }
 0x2f2   :  { %p675_p11 = pnand %p673_p10, %p670_p9 }
 0x2f4   :  { %678 = shalt.err (!%p675_p11)
}
 0x2f5   :  { %393 = dma.vmem_to_hbm [thread:$0]  %s391_s8, 128, %s817_s7, [#allocation4]  }
 0x2f6   :  { %685 = dma.done.wait [#allocation4], 128  }
 0x2f7   :  { %686 = vsyncadd [#allocation4], 4294967168 }
 0x2f8   :  { %397 = vsyncpa [#allocation3], 1 }
 0x2f9   :  { %398 = vsyncpa [#allocation6], 1 }
 0x2fa   :  { %399 = vsyncpa [#allocation9], 1 }
 0x2fb   :  { %400 = vsyncpa [#allocation4], 1 }

</bundles_post_ra>
